<compile_context>
chip_gen: v5e
topology: v5e:2x2
jax: 0.10.0
libtpu: 0.0.40
codegen_flags: <defaults>
</compile_context>

<pallas_src>
import jax
import jax.numpy as jnp
from jax.experimental import pallas as pl
from jax.experimental.pallas import tpu as pltpu


def _weight_kernel(x_ref, coef_ref, b_ref, o_ref, acc_ref):
    # Grid = (batch tiles [parallel], reduction tiles over C*HW [arbitrary]).
    #   x_ref:    (tn, tk)  slab of the (N, C*HW) input, native dtype
    #   coef_ref: (tk, G)   fused conv + spatial-sum + group-select coefficients
    #   b_ref:    (1, G)    conv bias pre-scaled by H*W
    #   o_ref:    (tn, G)   per-group softmax weights (written on last k step)
    #   acc_ref:  (tn, G)   f32 accumulator, resident across the reduction axis
    k = pl.program_id(1)

    @pl.when(k == 0)
    def _():
        acc_ref[...] = jnp.zeros_like(acc_ref)

    # Single MXU pass: fused grouped 3x3 conv, spatial sum and per-group channel
    # reduction.  f32 accumulation regardless of the input dtype; no full-tile
    # f32 temporary of x is materialized.
    acc_ref[...] += jnp.dot(x_ref[...], coef_ref[...],
                            preferred_element_type=jnp.float32)

    @pl.when(k == pl.num_programs(1) - 1)
    def _():
        y = acc_ref[...] + b_ref[...]                  # (tn, G)
        m = jnp.max(y, axis=-1, keepdims=True)
        e = jnp.exp(y - m)
        s = jnp.sum(e, axis=-1, keepdims=True)
        r = pl.reciprocal(s, approx=True)              # EUP slot
        r = r * (2.0 - s * r)                          # one Newton step -> ~f32 accuracy
        o_ref[...] = (e * r).astype(o_ref.dtype)


def _round_up(v, m):
    return (v + m - 1) // m * m


def _vmem_budget_bytes():
    """Scoped-VMEM limit: ~3/4 of physical VMEM (96 MiB on v5e/v6e's 128 MiB,
    48 MiB on v7x's 64 MiB per TC); conservative 48 MiB if the query fails."""
    phys = 64 * 1024 * 1024
    try:
        phys = int(getattr(pltpu.get_tpu_info(), "vmem_capacity_bytes", phys))
    except Exception:
        pass
    return int(min(96 * 1024 * 1024, (phys * 3) // 4))


def _pick_tiles(N, K128, itemsize, x_block_budget):
    """Pick (tn, tk): x block as large as the budget allows (amortize the
    ~0.35 us/step pipeline overhead) while double-buffering stays inside the
    scoped VMEM limit."""
    if N >= 16:
        # Guarantee >= 2 batch tiles so both v7x TensorCores get work from the
        # "parallel" axis; keep the tile a multiple of 8 (sublane alignment).
        tn = max(8, (N // 2) // 8 * 8)
    else:
        tn = N
    # Don't let a huge batch tile leave fewer than 128 lanes for the reduction tile.
    max_rows = max(1, x_block_budget // (128 * itemsize))
    if tn > max_rows:
        tn = min(N, max(8, (max_rows // 8) * 8))
    # Reduction tile: largest multiple of 128 that fits next to tn.
    tk = (x_block_budget // (tn * itemsize)) // 128 * 128
    tk = max(128, min(tk, K128))
    return tn, tk


def weight_forward(x, conv_w, conv_b, group):
    """x: (N, C, H, W); conv_w: (group, C//group, 3, 3); conv_b: (group,)."""
    N, C, H, W = x.shape
    HW = H * W
    rep = C // group
    K = C * HW
    f32 = jnp.float32
    HIGH = jax.lax.Precision.HIGHEST

    # coef[c, h, w] = sum of channel c's filter taps whose zero-padded 3x3 window
    # covers (h, w): interior positions see all 9 taps, borders fewer.
    # multiply-reduce of x against coef == spatial sum of the grouped conv (pre-bias).
    hh = jnp.arange(H)
    ww = jnp.arange(W)
    row_valid = jnp.stack([hh <= H - 2, jnp.ones_like(hh, dtype=bool), hh >= 1], -1).astype(f32)
    col_valid = jnp.stack([ww <= W - 2, jnp.ones_like(ww, dtype=bool), ww >= 1], -1).astype(f32)
    w_c = conv_w.reshape(C, 3, 3).astype(f32)          # channel c -> its group's filter
    coef = jnp.einsum('hi,cij,wj->chw', row_valid, w_c, col_valid, precision=HIGH)
    # Fold the per-group channel reduction into the coefficient matrix:
    # coef_mat[c*HW + p, g] = coef[c, p] if channel c belongs to group g else 0.
    gsel = ((jnp.arange(C) // rep)[:, None] == jnp.arange(group)[None, :]).astype(f32)
    coef_mat = (coef.reshape(C, HW)[:, :, None] * gsel[:, None, :]).reshape(K, group)
    coef_mat = coef_mat.astype(x.dtype)                # bf16 coef when x is bf16 (VMEM saver)

    # The bias contributes once per output spatial position -> pre-scale by H*W.
    b2 = (conv_b.astype(f32) * f32(HW)).reshape(1, group)

    # Lane-dense 2-D layout, native dtype (no upcast, no extra HBM traffic).
    x_flat = x.reshape(N, K)

    vmem_limit = _vmem_budget_bytes()
    K128 = _round_up(K, 128)
    tn, tk = _pick_tiles(N, K128, x_flat.dtype.itemsize, vmem_limit // 6)
    K_pad = _round_up(K128, tk)
    if K_pad != K:
        # Zero-pad the reduction axis; zeros contribute nothing to the dot.
        x_flat = jnp.pad(x_flat, ((0, 0), (0, K_pad - K)))
        coef_mat = jnp.pad(coef_mat, ((0, K_pad - K), (0, 0)))

    grid = (pl.cdiv(N, tn), K_pad // tk)
    out2d = pl.pallas_call(
        _weight_kernel,
        out_shape=jax.ShapeDtypeStruct((N, group), x.dtype),
        grid=grid,
        in_specs=[
            pl.BlockSpec((tn, tk), lambda i, k: (i, k)),       # x slab (tiled N x K)
            pl.BlockSpec((tk, group), lambda i, k: (k, 0)),    # coefficient slab
            pl.BlockSpec((1, group), lambda i, k: (0, 0)),     # pre-scaled bias
        ],
        out_specs=pl.BlockSpec((tn, group), lambda i, k: (i, 0)),
        scratch_shapes=[pltpu.VMEM((tn, group), jnp.float32)],
        compiler_params=pltpu.CompilerParams(
            dimension_semantics=("parallel", "arbitrary"),
            vmem_limit_bytes=vmem_limit),
    )(x_flat, coef_mat, b2)

    # Channel c of the final output carries the softmax weight of group c // rep
    # (torch repeat + interleave-cat == contiguous block repeat).
    return jnp.repeat(out2d, rep, axis=1).reshape(N, C, 1, 1)


def weight_reference(x, conv_w, conv_b, group):
    """Pure-JAX reference matching the PyTorch forward."""
    rep = x.shape[1] // group
    y = jax.lax.conv_general_dilated(
        x, conv_w, window_strides=(1, 1), padding=((1, 1), (1, 1)),
        dimension_numbers=("NCHW", "OIHW", "NCHW"), feature_group_count=group,
        precision=jax.lax.Precision.HIGHEST)
    y = y + conv_b.reshape(1, group, 1, 1)
    s = jnp.sum(y, axis=(2, 3), keepdims=True)         # (N, G, 1, 1)
    sm = jax.nn.softmax(s, axis=1)
    return jnp.repeat(sm, rep, axis=1)                  # (N, C, 1, 1)


if __name__ == "__main__":
    N, C, H, W = 2, 4, 16, 16
    group = 2
    rep = C // group

    key = jax.random.PRNGKey(0)
    k1, k2, k3 = jax.random.split(key, 3)
    x = jax.random.normal(k1, (N, C, H, W), dtype=jnp.float32)

    # Deterministic conv params (Kaiming-uniform-style bounds, like nn.Conv2d defaults).
    fan_in = rep * 3 * 3
    bound = 1.0 / (fan_in ** 0.5)
    conv_w = jax.random.uniform(k2, (group, rep, 3, 3), jnp.float32, -bound, bound)
    conv_b = jax.random.uniform(k3, (group,), jnp.float32, -bound, bound)

    out = jax.block_until_ready(weight_forward(x, conv_w, conv_b, group))
    ref = weight_reference(x, conv_w, conv_b, group)

    assert out.shape == (N, C, 1, 1), out.shape
    # MXU accumulation order differs from the conv-based reference; 2e-3 is still
    # far below any structural error (group mapping / borders / bias are O(1e-2..1)).
    assert jnp.allclose(out, ref, rtol=2e-3, atol=2e-3), (out, ref)
    print("KERNEL_OK")
</pallas_src>

<mosaic_0001>
module attributes {stable_mosaic.version = 11 : i64} {
  func.func @_weight_kernel(%arg0: i32, %arg1: i32, %arg2: memref<2x1024xf32, #tpu.memory_space<vmem>>, %arg3: memref<1024x2xf32, #tpu.memory_space<vmem>>, %arg4: memref<1x2xf32, #tpu.memory_space<vmem>>, %arg5: memref<2x2xf32, #tpu.memory_space<vmem>>, %arg6: memref<2x2xf32, #tpu.memory_space<vmem>>) attributes {dimension_semantics = [#tpu.dimension_semantics<parallel>, #tpu.dimension_semantics<arbitrary>], iteration_bounds = array<i64: 1, 1>, scalar_prefetch = 0 : i64, scratch_operands = 1 : i64, tpu.core_type = #tpu.core_type<tc>, window_params = [{transform_indices = @transform_0, window_bounds = array<i64: 2, 1024>}, {transform_indices = @transform_1, window_bounds = array<i64: 1024, 2>}, {pipeline_mode = #tpu.pipeline_mode<synchronous>, transform_indices = @transform_2, window_bounds = array<i64: 1, 2>}, {transform_indices = @transform_3, window_bounds = array<i64: 2, 2>}]} {
    %c0_i32 = arith.constant 0 : i32
    %0 = arith.cmpi eq, %arg1, %c0_i32 : i32
    %1 = arith.extui %0 : i1 to i32
    %c0_i32_0 = arith.constant 0 : i32
    %2 = arith.cmpi ne, %1, %c0_i32_0 : i32
    scf.if %2 {
      %cst_10 = arith.constant 0.000000e+00 : f32
      %12 = vector.broadcast %cst_10 : f32 to vector<2x2xf32>
      %c0_11 = arith.constant 0 : index
      %c0_12 = arith.constant 0 : index
      %13 = vector.load %arg6[%c0_11, %c0_12] : memref<2x2xf32, #tpu.memory_space<vmem>>, vector<2x2xf32>
      tpu.vector_store %arg6[%c0_11, %c0_12], %12 {strides = array<i32>} : memref<2x2xf32, #tpu.memory_space<vmem>>, vector<2x2xf32>,
    } else {
    }
    %c0 = arith.constant 0 : index
    %c0_1 = arith.constant 0 : index
    %3 = vector.load %arg6[%c0, %c0_1] : memref<2x2xf32, #tpu.memory_space<vmem>>, vector<2x2xf32>
    %c0_2 = arith.constant 0 : index
    %c0_3 = arith.constant 0 : index
    %4 = vector.load %arg2[%c0_2, %c0_3] : memref<2x1024xf32, #tpu.memory_space<vmem>>, vector<2x1024xf32>
    %c0_4 = arith.constant 0 : index
    %c0_5 = arith.constant 0 : index
    %5 = vector.load %arg3[%c0_4, %c0_5] : memref<1024x2xf32, #tpu.memory_space<vmem>>, vector<1024x2xf32>
    %cst = arith.constant dense<0.000000e+00> : vector<2x2xf32>
    %6 = tpu.matmul %4, %5, %cst {dimension_numbers = #tpu.dot_dimension_numbers<[1], [0], [0], [1], [0, 0, 1, 1], [], []>} : vector<2x1024xf32>, vector<1024x2xf32>, vector<2x2xf32> -> vector<2x2xf32>
    %7 = arith.addf %3, %6 : vector<2x2xf32>
    %c0_6 = arith.constant 0 : index
    %c0_7 = arith.constant 0 : index
    %8 = vector.load %arg6[%c0_6, %c0_7] : memref<2x2xf32, #tpu.memory_space<vmem>>, vector<2x2xf32>
    tpu.vector_store %arg6[%c0_6, %c0_7], %7 {strides = array<i32>} : memref<2x2xf32, #tpu.memory_space<vmem>>, vector<2x2xf32>,
    %c0_i32_8 = arith.constant 0 : i32
    %9 = arith.cmpi eq, %arg1, %c0_i32_8 : i32
    %10 = arith.extui %9 : i1 to i32
    %c0_i32_9 = arith.constant 0 : i32
    %11 = arith.cmpi ne, %10, %c0_i32_9 : i32
    scf.if %11 {
      %c0_10 = arith.constant 0 : index
      %c0_11 = arith.constant 0 : index
      %12 = vector.load %arg6[%c0_10, %c0_11] : memref<2x2xf32, #tpu.memory_space<vmem>>, vector<2x2xf32>
      %c0_12 = arith.constant 0 : index
      %c0_13 = arith.constant 0 : index
      %13 = vector.load %arg4[%c0_12, %c0_13] : memref<1x2xf32, #tpu.memory_space<vmem>>, vector<1x2xf32>
      %14 = vector.broadcast %13 : vector<1x2xf32> to vector<2x2xf32>
      %15 = arith.addf %12, %14 : vector<2x2xf32>
      %cst_14 = arith.constant dense<0xFF800000> : vector<2xf32>
      %16 = vector.multi_reduction <maximumf>, %15, %cst_14 [1] : vector<2x2xf32> to vector<2xf32>
      %17 = vector.shape_cast %16 : vector<2xf32> to vector<2x1xf32>
      %18 = vector.broadcast %17 : vector<2x1xf32> to vector<2x2xf32>
      %19 = arith.subf %15, %18 : vector<2x2xf32>
      %20 = math.exp %19 : vector<2x2xf32>
      %cst_15 = arith.constant dense<0.000000e+00> : vector<2xf32>
      %21 = vector.multi_reduction <add>, %20, %cst_15 [1] : vector<2x2xf32> to vector<2xf32>
      %22 = vector.shape_cast %21 : vector<2xf32> to vector<2x1xf32>
      %23 = tpu.reciprocal %22 {approx = true} : vector<2x1xf32> -> vector<2x1xf32>
      %24 = arith.mulf %22, %23 : vector<2x1xf32>
      %cst_16 = arith.constant 2.000000e+00 : f32
      %25 = vector.broadcast %cst_16 : f32 to vector<2x1xf32>
      %26 = arith.subf %25, %24 : vector<2x1xf32>
      %27 = arith.mulf %23, %26 : vector<2x1xf32>
      %28 = vector.broadcast %27 : vector<2x1xf32> to vector<2x2xf32>
      %29 = arith.mulf %20, %28 : vector<2x2xf32>
      %c0_17 = arith.constant 0 : index
      %c0_18 = arith.constant 0 : index
      %30 = vector.load %arg5[%c0_17, %c0_18] : memref<2x2xf32, #tpu.memory_space<vmem>>, vector<2x2xf32>
      tpu.vector_store %arg5[%c0_17, %c0_18], %29 {strides = array<i32>} : memref<2x2xf32, #tpu.memory_space<vmem>>, vector<2x2xf32>,
    } else {
    }
    return
  }
  func.func @transform_0(%arg0: i32, %arg1: i32) -> (i32, i32) {
    %c0_i32 = arith.constant 0 : i32
    return %arg0, %arg1 : i32, i32
  }
  func.func @transform_1(%arg0: i32, %arg1: i32) -> (i32, i32) {
    %c0_i32 = arith.constant 0 : i32
    %c0_i32_0 = arith.constant 0 : i32
    return %arg1, %c0_i32 : i32, i32
  }
  func.func @transform_2(%arg0: i32, %arg1: i32) -> (i32, i32) {
    %c0_i32 = arith.constant 0 : i32
    %c0_i32_0 = arith.constant 0 : i32
    %c0_i32_1 = arith.constant 0 : i32
    return %c0_i32, %c0_i32_0 : i32, i32
  }
  func.func @transform_3(%arg0: i32, %arg1: i32) -> (i32, i32) {
    %c0_i32 = arith.constant 0 : i32
    %c0_i32_0 = arith.constant 0 : i32
    return %arg0, %c0_i32 : i32, i32
  }
}

</mosaic_0001>

<bundles_post_ra>
// kernel: tpu_custom_call.1
= control target key start
LH: loop header
LB: loop body
LE: loop exit
PB: predicated region body
PF: predicated region fallthrough
CT: control target
= control target key end

     0   :  { %s832_s0 = inlined_call_operand.vmem [shape: f32[2,1024], index: 0, kind: input, shape index: {}]   ;;  %s833_s1 = inlined_call_operand.vmem [shape: f32[1024,2], index: 1, kind: input, shape index: {}]   ;;  %s834_s2 = inlined_call_operand.vmem [shape: f32[1,2], index: 2, kind: input, shape index: {}]   ;;  %s835_s3 = inlined_call_operand.hbm [shape: f32[2,2], index: 3, kind: output, shape index: {}]  }
   0x1   :  { %v39_v0 = vld [vmem:[%s833_s1 + $0x78] sm:$0xff]  ;;  %v38_v2 = vld [vmem:[%s833_s1 + $0x70] sm:$0xff]  ;;  %v37_v6 = vld [vmem:[%s833_s1 + $0x68] sm:$0xff] }
   0x2   :  { %v71_v1 = vld [vmem:[%s833_s1 + $0x178] sm:$0xff]  ;;  %173 = vmatpush.msra.mxu0 %v39_v0  ;;  %v70_v4 = vld [vmem:[%s833_s1 + $0x170] sm:$0xff]  ;;  %v69_v8 = vld [vmem:[%s833_s1 + $0x168] sm:$0xff] }
   0x3   :  { %213 = vmatpush.msra.mxu2 %v71_v1  ;;  %v55_v3 = vld [vmem:[%s833_s1 + $0xf8] sm:$0xff]  ;;  %v54_v7 = vld [vmem:[%s833_s1 + $0xf0] sm:$0xff]  ;;  %v53_v10 = vld [vmem:[%s833_s1 + $0xe8] sm:$0xff] }
   0x4   :  { %v87_v5 = vld [vmem:[%s833_s1 + $0x1f8] sm:$0xff]  ;;  %193 = vmatpush.msra.mxu1 %v55_v3  ;;  %174 = vmatpush.msra.mxu0 %v38_v2  ;;  %v86_v9 = vld [vmem:[%s833_s1 + $0x1f0] sm:$0xff]  ;;  %v36_v11 = vld [vmem:[%s833_s1 + $0x60] sm:$0xff] }
   0x5   :  { %233 = vmatpush.msra.mxu3 %v87_v5  ;;  %214 = vmatpush.msra.mxu2 %v70_v4  ;;  %v68_v12 = vld [vmem:[%s833_s1 + $0x160] sm:$0xff]  ;;  %v85_v13 = vld [vmem:[%s833_s1 + $0x1e8] sm:$0xff]  ;;  %v35_v16 = vld [vmem:[%s833_s1 + $0x58] sm:$0xff] }
   0x6   :  { %194 = vmatpush.msra.mxu1 %v54_v7  ;;  %175 = vmatpush.msra.mxu0 %v37_v6  ;;  %v52_v14 = vld [vmem:[%s833_s1 + $0xe0] sm:$0xff]  ;;  %v67_v17 = vld [vmem:[%s833_s1 + $0x158] sm:$0xff]  ;;  %v34_v20 = vld [vmem:[%s833_s1 + $0x50] sm:$0xff] }
   0x7   :  { %234 = vmatpush.msra.mxu3 %v86_v9  ;;  %215 = vmatpush.msra.mxu2 %v69_v8  ;;  %v84_v15 = vld [vmem:[%s833_s1 + $0x1e0] sm:$0xff]  ;;  %v51_v18 = vld [vmem:[%s833_s1 + $0xd8] sm:$0xff]  ;;  %v66_v21 = vld [vmem:[%s833_s1 + $0x150] sm:$0xff] }
   0x8   :  { %195 = vmatpush.msra.mxu1 %v53_v10  ;;  %176 = vmatpush.msra.mxu0 %v36_v11  ;;  %v83_v19 = vld [vmem:[%s833_s1 + $0x1d8] sm:$0xff]  ;;  %v50_v22 = vld [vmem:[%s833_s1 + $0xd0] sm:$0xff]  ;;  %v33_v24 = vld [vmem:[%s833_s1 + $0x48] sm:$0xff] }
   0x9   :  { %235 = vmatpush.msra.mxu3 %v85_v13  ;;  %216 = vmatpush.msra.mxu2 %v68_v12  ;;  %v82_v23 = vld [vmem:[%s833_s1 + $0x1d0] sm:$0xff]  ;;  %v65_v25 = vld [vmem:[%s833_s1 + $0x148] sm:$0xff]  ;;  %v32_v28 = vld [vmem:[%s833_s1 + $0x40] sm:$0xff] }
   0xa   :  { %196 = vmatpush.msra.mxu1 %v52_v14  ;;  %177 = vmatpush.msra.mxu0 %v35_v16  ;;  %v49_v26 = vld [vmem:[%s833_s1 + $0xc8] sm:$0xff]  ;;  %v64_v29 = vld [vmem:[%s833_s1 + $0x140] sm:$0xff]  ;;  %v31_v32 = vld [vmem:[%s833_s1 + $0x38] sm:$0xff] }
   0xb   :  { %236 = vmatpush.msra.mxu3 %v84_v15  ;;  %217 = vmatpush.msra.mxu2 %v67_v17  ;;  %v81_v27 = vld [vmem:[%s833_s1 + $0x1c8] sm:$0xff]  ;;  %v48_v30 = vld [vmem:[%s833_s1 + $0xc0] sm:$0xff]  ;;  %v63_v33 = vld [vmem:[%s833_s1 + $0x138] sm:$0xff] }
   0xc   :  { %197 = vmatpush.msra.mxu1 %v51_v18  ;;  %178 = vmatpush.msra.mxu0 %v34_v20  ;;  %v80_v31 = vld [vmem:[%s833_s1 + $0x1c0] sm:$0xff]  ;;  %v47_v34 = vld [vmem:[%s833_s1 + $0xb8] sm:$0xff]  ;;  %v30_v36 = vld [vmem:[%s833_s1 + $0x30] sm:$0xff] }
   0xd   :  { %237 = vmatpush.msra.mxu3 %v83_v19  ;;  %218 = vmatpush.msra.mxu2 %v66_v21  ;;  %v79_v35 = vld [vmem:[%s833_s1 + $0x1b8] sm:$0xff]  ;;  %v62_v37 = vld [vmem:[%s833_s1 + $0x130] sm:$0xff]  ;;  %v29_v40 = vld [vmem:[%s833_s1 + $0x28] sm:$0xff] }
   0xe   :  { %198 = vmatpush.msra.mxu1 %v50_v22  ;;  %179 = vmatpush.msra.mxu0 %v33_v24  ;;  %v46_v38 = vld [vmem:[%s833_s1 + $0xb0] sm:$0xff]  ;;  %v61_v41 = vld [vmem:[%s833_s1 + $0x128] sm:$0xff]  ;;  %v28_v44 = vld [vmem:[%s833_s1 + $0x20] sm:$0xff] }
   0xf   :  { %238 = vmatpush.msra.mxu3 %v82_v23  ;;  %219 = vmatpush.msra.mxu2 %v65_v25  ;;  %v78_v39 = vld [vmem:[%s833_s1 + $0x1b0] sm:$0xff]  ;;  %v45_v42 = vld [vmem:[%s833_s1 + $0xa8] sm:$0xff]  ;;  %v60_v45 = vld [vmem:[%s833_s1 + $0x120] sm:$0xff] }
  0x10   :  { %199 = vmatpush.msra.mxu1 %v49_v26  ;;  %180 = vmatpush.msra.mxu0 %v32_v28  ;;  %v77_v43 = vld [vmem:[%s833_s1 + $0x1a8] sm:$0xff]  ;;  %v44_v46 = vld [vmem:[%s833_s1 + $0xa0] sm:$0xff]  ;;  %v27_v48 = vld [vmem:[%s833_s1 + $0x18] sm:$0xff] }
  0x11   :  { %239 = vmatpush.msra.mxu3 %v81_v27  ;;  %220 = vmatpush.msra.mxu2 %v64_v29  ;;  %v76_v47 = vld [vmem:[%s833_s1 + $0x1a0] sm:$0xff]  ;;  %v59_v49 = vld [vmem:[%s833_s1 + $0x118] sm:$0xff]  ;;  %v26_v52 = vld [vmem:[%s833_s1 + $0x10] sm:$0xff] }
  0x12   :  { %200 = vmatpush.msra.mxu1 %v48_v30  ;;  %181 = vmatpush.msra.mxu0 %v31_v32  ;;  %v43_v50 = vld [vmem:[%s833_s1 + $0x98] sm:$0xff]  ;;  %v58_v53 = vld [vmem:[%s833_s1 + $0x110] sm:$0xff]  ;;  %v25_v56 = vld [vmem:[%s833_s1 + $0x8] sm:$0xff] }
  0x13   :  { %240 = vmatpush.msra.mxu3 %v80_v31  ;;  %221 = vmatpush.msra.mxu2 %v63_v33  ;;  %v75_v51 = vld [vmem:[%s833_s1 + $0x198] sm:$0xff]  ;;  %v42_v54 = vld [vmem:[%s833_s1 + $0x90] sm:$0xff]  ;;  %v57_v57 = vld [vmem:[%s833_s1 + $0x108] sm:$0xff] }
  0x14   :  { %201 = vmatpush.msra.mxu1 %v47_v34  ;;  %182 = vmatpush.msra.mxu0 %v30_v36  ;;  %v74_v55 = vld [vmem:[%s833_s1 + $0x190] sm:$0xff]  ;;  %v41_v58 = vld [vmem:[%s833_s1 + $0x88] sm:$0xff]  ;;  %v24_v60 = vld [vmem:[%s833_s1] sm:$0xff] }
  0x15   :  { %241 = vmatpush.msra.mxu3 %v79_v35  ;;  %222 = vmatpush.msra.mxu2 %v62_v37  ;;  %v73_v59 = vld [vmem:[%s833_s1 + $0x188] sm:$0xff]  ;;  %v56_v61 = vld [vmem:[%s833_s1 + $0x100] sm:$0xff]  ;;  %v103_v62 = vld [vmem:[%s833_s1 + $0x278] sm:$0xff] }
  0x16   :  { %202 = vmatpush.msra.mxu1 %v46_v38  ;;  %183 = vmatpush.msra.mxu0 %v29_v40  ;;  %v135_v63 = vld [vmem:[%s833_s1 + $0x378] sm:$0xff]  ;;  %v40_v0 = vld [vmem:[%s833_s1 + $0x80] sm:$0xff]  ;;  %v102_v2 = vld [vmem:[%s833_s1 + $0x270] sm:$0xff] }
  0x17   :  { %242 = vmatpush.msra.mxu3 %v78_v39  ;;  %223 = vmatpush.msra.mxu2 %v61_v41  ;;  %v72_v1 = vld [vmem:[%s833_s1 + $0x180] sm:$0xff]  ;;  %v119_v3 = vld [vmem:[%s833_s1 + $0x2f8] sm:$0xff]  ;;  %v134_v4 = vld [vmem:[%s833_s1 + $0x370] sm:$0xff] }
  0x18   :  { %203 = vmatpush.msra.mxu1 %v45_v42  ;;  %184 = vmatpush.msra.mxu0 %v28_v44  ;;  %v151_v5 = vld [vmem:[%s833_s1 + $0x3f8] sm:$0xff]  ;;  %v101_v6 = vld [vmem:[%s833_s1 + $0x268] sm:$0xff]  ;;  %v118_v7 = vld [vmem:[%s833_s1 + $0x2f0] sm:$0xff] }
  0x19   :  { %243 = vmatpush.msra.mxu3 %v77_v43  ;;  %224 = vmatpush.msra.mxu2 %v60_v45  ;;  %v133_v8 = vld [vmem:[%s833_s1 + $0x368] sm:$0xff]  ;;  %v150_v9 = vld [vmem:[%s833_s1 + $0x3f0] sm:$0xff]  ;;  %v100_v10 = vld [vmem:[%s833_s1 + $0x260] sm:$0xff] }
  0x1a   :  { %204 = vmatpush.msra.mxu1 %v44_v46  ;;  %185 = vmatpush.msra.mxu0 %v27_v48  ;;  %v117_v11 = vld [vmem:[%s833_s1 + $0x2e8] sm:$0xff]  ;;  %v22_v12 = vld [vmem:[%s832_s0] sm:$0xff]  ;;  %v99_v15 = vld [vmem:[%s833_s1 + $0x258] sm:$0xff] }
  0x1b   :  { %244 = vmatpush.msra.mxu3 %v76_v47  ;;  %225 = vmatpush.msra.mxu2 %v59_v49  ;;  %v132_v13 = vld [vmem:[%s833_s1 + $0x360] sm:$0xff]  ;;  %v149_v14 = vld [vmem:[%s833_s1 + $0x3e8] sm:$0xff]  ;;  %154 = vst [vmem:[#allocation1] ss:$4 sm:$0xff] %v22_v12  ;;  %v131_v17 = vld [vmem:[%s833_s1 + $0x358] sm:$0xff] }
  0x1c   :  { %205 = vmatpush.msra.mxu1 %v43_v50  ;;  %186 = vmatpush.msra.mxu0 %v26_v52  ;;  %v116_v16 = vld [vmem:[%s833_s1 + $0x2e0] sm:$0xff]  ;;  %v98_v19 = vld [vmem:[%s833_s1 + $0x250] sm:$0xff]  ;;  %v115_v20 = vld [vmem:[%s833_s1 + $0x2d8] sm:$0xff] }
  0x1d   :  { %245 = vmatpush.msra.mxu3 %v75_v51  ;;  %226 = vmatpush.msra.mxu2 %v58_v53  ;;  %v148_v18 = vld [vmem:[%s833_s1 + $0x3e0] sm:$0xff]  ;;  %v130_v21 = vld [vmem:[%s833_s1 + $0x350] sm:$0xff]  ;;  %v147_v22 = vld [vmem:[%s833_s1 + $0x3d8] sm:$0xff] }
  0x1e   :  { %206 = vmatpush.msra.mxu1 %v42_v54  ;;  %187 = vmatpush.msra.mxu0 %v25_v56  ;;  %v97_v23 = vld [vmem:[%s833_s1 + $0x248] sm:$0xff]  ;;  %v114_v24 = vld [vmem:[%s833_s1 + $0x2d0] sm:$0xff]  ;;  %v96_v28 = vld [vmem:[%s833_s1 + $0x240] sm:$0xff] }
  0x1f   :  { %246 = vmatpush.msra.mxu3 %v74_v55  ;;  %227 = vmatpush.msra.mxu2 %v57_v57  ;;  %v129_v25 = vld [vmem:[%s833_s1 + $0x348] sm:$0xff]  ;;  %v146_v26 = vld [vmem:[%s833_s1 + $0x3d0] sm:$0xff]  ;;  %v128_v30 = vld [vmem:[%s833_s1 + $0x340] sm:$0xff] }
  0x20   :  { %207 = vmatpush.msra.mxu1 %v41_v58  ;;  %188 = vmatpush.msra.mxu0 %v24_v60  ;;  %v23_v27 = vld [vmem:[%s832_s0 + $0x8] sm:$0xff]  ;;  %v95_v32 = vld [vmem:[%s833_s1 + $0x238] sm:$0xff]  ;;  %v112_v33 = vld [vmem:[%s833_s1 + $0x2c0] sm:$0xff] }
  0x21   :  { %247 = vmatpush.msra.mxu3 %v73_v59  ;;  %228 = vmatpush.msra.mxu2 %v56_v61  ;;  %v113_v29 = vld [vmem:[%s833_s1 + $0x2c8] sm:$0xff]  ;;  %156 = vst [vmem:[#allocation1 + $0x20] ss:$4 sm:$0xff] %v23_v27  ;;  %v127_v34 = vld [vmem:[%s833_s1 + $0x338] sm:$0xff]  ;;  %v144_v35 = vld [vmem:[%s833_s1 + $0x3c0] sm:$0xff] }
  0x22   :  { %253 = vmatpush.msrb.mxu0 %v103_v62  ;;  %208 = vmatpush.msra.mxu1 %v40_v0  ;;  %v145_v31 = vld [vmem:[%s833_s1 + $0x3c8] sm:$0xff] }
  0x23   :  { %293 = vmatpush.msrb.mxu2 %v135_v63  ;;  %248 = vmatpush.msra.mxu3 %v72_v1 }
  0x24   :  { %254 = vmatpush.msrb.mxu0 %v102_v2  ;;  %273 = vmatpush.msrb.mxu1 %v119_v3 }
  0x25   :  { %294 = vmatpush.msrb.mxu2 %v134_v4  ;;  %313 = vmatpush.msrb.mxu3 %v151_v5 }
  0x26   :  { %255 = vmatpush.msrb.mxu0 %v101_v6  ;;  %274 = vmatpush.msrb.mxu1 %v118_v7 }
  0x27   :  { %295 = vmatpush.msrb.mxu2 %v133_v8  ;;  %314 = vmatpush.msrb.mxu3 %v150_v9 }
  0x28   :  { %256 = vmatpush.msrb.mxu0 %v100_v10  ;;  %275 = vmatpush.msrb.mxu1 %v117_v11 }
  0x29   :  { %296 = vmatpush.msrb.mxu2 %v132_v13  ;;  %315 = vmatpush.msrb.mxu3 %v149_v14 }
  0x2a   :  { %257 = vmatpush.msrb.mxu0 %v99_v15  ;;  %276 = vmatpush.msrb.mxu1 %v116_v16 }
  0x2b   :  { %297 = vmatpush.msrb.mxu2 %v131_v17  ;;  %316 = vmatpush.msrb.mxu3 %v148_v18 }
  0x2c   :  { %258 = vmatpush.msrb.mxu0 %v98_v19  ;;  %277 = vmatpush.msrb.mxu1 %v115_v20 }
  0x2d   :  { %298 = vmatpush.msrb.mxu2 %v130_v21  ;;  %317 = vmatpush.msrb.mxu3 %v147_v22 }
  0x2e   :  { %259 = vmatpush.msrb.mxu0 %v97_v23  ;;  %278 = vmatpush.msrb.mxu1 %v114_v24 }
  0x2f   :  { %299 = vmatpush.msrb.mxu2 %v129_v25  ;;  %318 = vmatpush.msrb.mxu3 %v146_v26 }
  0x30   :  { %260 = vmatpush.msrb.mxu0 %v96_v28  ;;  %279 = vmatpush.msrb.mxu1 %v113_v29 }
  0x31   :  { %8 = vsyncpa [#allocation4], 0  ;;  %300 = vmatpush.msrb.mxu2 %v128_v30  ;;  %319 = vmatpush.msrb.mxu3 %v145_v31  ;;  %v94_v36 = vld [vmem:[%s833_s1 + $0x230] sm:$0xff]  ;;  %v111_v37 = vld [vmem:[%s833_s1 + $0x2b8] sm:$0xff]  ;;  %vm19_vm0 = vcmask 9216   ;;  %v409_v10 = vmov 0.0  }
  0x32   :  { %261 = vmatpush.msrb.mxu0 %v95_v32  ;;  %280 = vmatpush.msrb.mxu1 %v112_v33  ;;  %v126_v38 = vld [vmem:[%s833_s1 + $0x330] sm:$0xff]  ;;  %v143_v39 = vld [vmem:[%s833_s1 + $0x3b8] sm:$0xff]  ;;  %v93_v40 = vld [vmem:[%s833_s1 + $0x228] sm:$0xff]  ;;  %20 = vst.msk [vmem:[#allocation2] sm:$0x3] %vm19_vm0, %v409_v10  ;;  %s410_s27 = smov [#allocation3]  }
  0x33   :  { %301 = vmatpush.msrb.mxu2 %v127_v34  ;;  %320 = vmatpush.msrb.mxu3 %v144_v35  ;;  %v110_v41 = vld [vmem:[%s833_s1 + $0x2b0] sm:$0xff]  ;;  %v125_v42 = vld [vmem:[%s833_s1 + $0x328] sm:$0xff]  ;;  %v92_v45 = vld [vmem:[%s833_s1 + $0x220] sm:$0xff]  ;;  %s367_s30 = sshll.u32 %s835_s3, 4  ;;  %s368_s30 = int_to_ptr.hbm [resolvable:$true] %s367_s30 }
  0x34   :  { %262 = vmatpush.msrb.mxu0 %v94_v36  ;;  %281 = vmatpush.msrb.mxu1 %v111_v37  ;;  %v142_v43 = vld [vmem:[%s833_s1 + $0x3b0] sm:$0xff]  ;;  %v109_v46 = vld [vmem:[%s833_s1 + $0x2a8] sm:$0xff]  ;;  %v124_v47 = vld [vmem:[%s833_s1 + $0x320] sm:$0xff] }
  0x35   :  { %302 = vmatpush.msrb.mxu2 %v126_v38  ;;  %321 = vmatpush.msrb.mxu3 %v143_v39  ;;  %v159_v44 = vld.sshfl [vmem:[#allocation1 + $0x10] sm:$0xff pattern:$0x73625140]  ;;  %v141_v48 = vld [vmem:[%s833_s1 + $0x3a8] sm:$0xff]  ;;  %v91_v51 = vld [vmem:[%s833_s1 + $0x218] sm:$0xff] }
  0x36   :  { %263 = vmatpush.msrb.mxu0 %v93_v40  ;;  %282 = vmatpush.msrb.mxu1 %v110_v41  ;;  %v157_v49 = vld.sshfl [vmem:[#allocation1] sm:$0xff pattern:$0x73625140]  ;;  %v160_v50 = vld.sshfl [vmem:[#allocation1 + $0x18] sm:$0xff pattern:$0x73625140] }
  0x37   :  { %303 = vmatpush.msrb.mxu2 %v125_v42  ;;  %322 = vmatpush.msrb.mxu3 %v142_v43  ;;  %v108_v52 = vld [vmem:[%s833_s1 + $0x2a0] sm:$0xff]  ;;  %v123_v53 = vld [vmem:[%s833_s1 + $0x318] sm:$0xff]  ;;  %v158_v55 = vld.sshfl [vmem:[#allocation1 + $0x8] sm:$0xff pattern:$0x73625140] }
  0x38   :  { %229 = vmatmul.f32.vlgmr.msra.gmra.mxu2 %v159_v44  ;;  %264 = vmatpush.msrb.mxu0 %v92_v45  ;;  %v140_v54 = vld [vmem:[%s833_s1 + $0x3a0] sm:$0xff]  ;;  %v90_v56 = vld [vmem:[%s833_s1 + $0x210] sm:$0xff]  ;;  %v107_v57 = vld [vmem:[%s833_s1 + $0x298] sm:$0xff] }
  0x39   :  { %283 = vmatpush.msrb.mxu1 %v109_v46  ;;  %304 = vmatpush.msrb.mxu2 %v124_v47  ;;  %v122_v58 = vld [vmem:[%s833_s1 + $0x310] sm:$0xff]  ;;  %v139_v59 = vld [vmem:[%s833_s1 + $0x398] sm:$0xff]  ;;  %v89_v60 = vld [vmem:[%s833_s1 + $0x208] sm:$0xff] }
  0x3a   :  { %323 = vmatpush.msrb.mxu3 %v141_v48  ;;  %189 = vmatmul.f32.vlgmr.msra.gmra.mxu0 %v157_v49  ;;  %v106_v61 = vld [vmem:[%s833_s1 + $0x290] sm:$0xff]  ;;  %v121_v62 = vld [vmem:[%s833_s1 + $0x308] sm:$0xff]  ;;  %v88_v0 = vld [vmem:[%s833_s1 + $0x200] sm:$0xff] }
  0x3b   :  { %249 = vmatmul.f32.vlgmr.msra.gmra.mxu3 %v160_v50  ;;  %265 = vmatpush.msrb.mxu0 %v91_v51  ;;  %v138_v63 = vld [vmem:[%s833_s1 + $0x390] sm:$0xff]  ;;  %v105_v1 = vld [vmem:[%s833_s1 + $0x288] sm:$0xff]  ;;  %v120_v2 = vld [vmem:[%s833_s1 + $0x300] sm:$0xff] }
  0x3c   :  { %284 = vmatpush.msrb.mxu1 %v108_v52  ;;  %305 = vmatpush.msrb.mxu2 %v123_v53  ;;  %v137_v3 = vld [vmem:[%s833_s1 + $0x388] sm:$0xff]  ;;  %v161_v4 = vld.sshfl [vmem:[#allocation1 + $0x20] sm:$0xff pattern:$0x73625140] }
  0x3d   :  { %324 = vmatpush.msrb.mxu3 %v140_v54  ;;  %209 = vmatmul.f32.vlgmr.msra.gmra.mxu1 %v158_v55  ;;  %v163_v5 = vld.sshfl [vmem:[#allocation1 + $0x30] sm:$0xff pattern:$0x73625140]  ;;  %v104_v6 = vld [vmem:[%s833_s1 + $0x280] sm:$0xff]  ;;  %v21_v24 = vld [vmem:[#allocation2] sm:$0x3] }
  0x3e   :  { %266 = vmatpush.msrb.mxu0 %v90_v56  ;;  %285 = vmatpush.msrb.mxu1 %v107_v57  ;;  %v136_v7 = vld [vmem:[%s833_s1 + $0x380] sm:$0xff]  ;;  %v162_v8 = vld.sshfl [vmem:[#allocation1 + $0x28] sm:$0xff pattern:$0x73625140] }
  0x3f   :  { %306 = vmatpush.msrb.mxu2 %v122_v58  ;;  %325 = vmatpush.msrb.mxu3 %v139_v59  ;;  %v164_v9 = vld.sshfl [vmem:[#allocation1 + $0x38] sm:$0xff pattern:$0x73625140]  ;;  %v378_v28 = vld [vmem:[%s834_s2] ss:$0 sm:$0xff]  ;;  %s365_s2 = sshll.u32 %s410_s27, 4  ;;  %s366_s2 = int_to_ptr.vmem [resolvable:$true] %s365_s2 }
  0x40   :  { %267 = vmatpush.msrb.mxu0 %v89_v60  ;;  %286 = vmatpush.msrb.mxu1 %v106_v61 }
  0x41   :  { %307 = vmatpush.msrb.mxu2 %v121_v62  ;;  %326 = vmatpush.msrb.mxu3 %v138_v63 }
  0x42   :  { %268 = vmatpush.msrb.mxu0 %v88_v0  ;;  %287 = vmatpush.msrb.mxu1 %v105_v1 }
  0x43   :  { %308 = vmatpush.msrb.mxu2 %v120_v2  ;;  %327 = vmatpush.msrb.mxu3 %v137_v3 }
  0x44   :  { %269 = vmatmul.f32.vlgmr.msrb.gmra.mxu0 %v161_v4  ;;  %309 = vmatmul.f32.vlgmr.msrb.gmra.mxu2 %v163_v5 }
  0x45   :  { %288 = vmatpush.msrb.mxu1 %v104_v6  ;;  %328 = vmatpush.msrb.mxu3 %v136_v7 }
  0x46   :  { %289 = vmatmul.f32.vlgmr.msrb.gmra.mxu1 %v162_v8  ;;  %329 = vmatmul.f32.vlgmr.msrb.gmra.mxu3 %v164_v9 }
  0xb7   :  { %v190_v11 = vpop.f32.mrf.mxu0 }
  0xba   :  { %v210_v12 = vpop.f32.mrf.mxu1 }
  0xbb   :  { %v211_v13 = vadd.f32 %v210_v12, %v190_v11  ;;  %v230_v14 = vpop.f32.mrf.mxu2 }
  0xbd   :  { %v231_v15 = vadd.f32 %v230_v14, %v211_v13 }
  0xbe   :  { %v250_v16 = vpop.f32.mrf.mxu3 }
  0xbf   :  { %v251_v17 = vadd.f32 %v250_v16, %v231_v15 }
  0xc1   :  { %v270_v18 = vpop.f32.mrf.mxu0 }
  0xc2   :  { %v271_v19 = vadd.f32 %v270_v18, %v251_v17 }
  0xc3   :  { %v290_v20 = vpop.f32.mrf.mxu1 }
  0xc4   :  { %v291_v21 = vadd.f32 %v290_v20, %v271_v19 }
  0xc7   :  { %v310_v22 = vpop.f32.mrf.mxu2 }
  0xc8   :  { %v311_v23 = vadd.f32 %v310_v22, %v291_v21 }
  0xc9   :  { %v330_v25 = vpop.f32.mrf.mxu3 }
  0xca   :  { %v331_v26 = vadd.f32 %v330_v25, %v311_v23 }
  0xcc   :  { %v333_v27 = vadd.f32 %v331_v26, %v21_v24 }
  0xce   :  { %335 = vst.msk [vmem:[#allocation2] sm:$0x3] %vm19_vm0, %v333_v27 }
  0xd5   :  { %v339_v29 = vld [vmem:[#allocation2] sm:$0x3] }
  0xd6   :  { %v344_v30 = vadd.f32 %v378_v28, %v339_v29 }
  0xd8   :  { %v345_v31 = vsel %vm19_vm0, %v344_v30, -inf }
  0xd9   :  { %346 = vmax.xlane.f32.xlu0 %v345_v31 }
 0x14c   :  { %v347_v32 = vpop.xlane.xlu0 %346 }
 0x14d   :  { %v348_v33 = vsub.f32 %v344_v30, %v347_v32 }
 0x14f   :  { %v349_v34 = vmul.f32 1.442695, %v348_v33 }
 0x151   :  { %379 = vpow2.f32 %v349_v34 }
 0x157   :  { %v380_v35 = vpop.eup %379 }
 0x158   :  { %v351_v36 = vsel %vm19_vm0, %v380_v35, 0.0 }
 0x159   :  { %352 = vadd.xlane.f32.xlu0 %v351_v36 }
 0x1cc   :  { %v353_v37 = vpop.xlane.xlu0 %352 }
 0x1cd   :  { %381 = vrcp.f32 %v353_v37 }
 0x1d3   :  { %v382_v38 = vpop.eup %381 }
 0x1d4   :  { %v355_v39 = vmul.f32 %v382_v38, %v353_v37 }
 0x1d6   :  { %v356_v40 = vsub.f32 2.0, %v355_v39 }
 0x1d8   :  { %v357_v41 = vmul.f32 %v382_v38, %v356_v40 }
 0x1da   :  { %v358_v42 = vmul.f32 %v380_v35, %v357_v41 }
 0x1dc   :  { %359 = vst.msk [vmem:[#allocation3] sm:$0x3] %vm19_vm0, %v358_v42 }
 0x1dd   :  { %370 = dma.vmem_to_hbm [thread:$0]  %s366_s2, 32, %s368_s30, [#allocation4]  }
 0x1de   :  { %407 = dma.done.wait [#allocation4], 32  }
 0x1df   :  { %408 = vsyncadd [#allocation4], 4294967264 }
 0x1e0   :  { %375 = vsyncpa [#allocation4], 1 }

</bundles_post_ra>
